<compile_context>
chip_gen: v7x
topology: tpu7x:2x2x1
jax: 0.10.0
libtpu: 0.0.40
codegen_flags: <defaults>
</compile_context>

<pallas_src>
import functools

import numpy as np
import jax
import jax.numpy as jnp
from jax import lax
from jax.experimental import pallas as pl
from jax.experimental.pallas import tpu as pltpu


# ---------------------------------------------------------------------------
# In-kernel helpers (shared by the kernels below)
# ---------------------------------------------------------------------------
def _scores_padded(x, w, b):
    """x:(S,H), w:(H,Npad), b:(1,Npad) -> padded scores (S,Npad) f32."""
    return jnp.dot(x, w, preferred_element_type=jnp.float32) + b


def _scores_and_ids(x, w, b, n_op):
    """-> (padded scores (S,Npad) f32, argmax ids (S,1) i32 over the true n_op cols)."""
    s_pad = _scores_padded(x, w, b)
    col = lax.broadcasted_iota(jnp.int32, s_pad.shape, 1)
    valid = col < n_op
    neg = jnp.finfo(jnp.float32).min
    sm = jnp.where(valid, s_pad, neg)
    mx = jnp.max(sm, axis=-1, keepdims=True)
    # first-maximal index over the real n_op columns (torch.max tie-break)
    ids = jnp.min(jnp.where((sm == mx) & valid, col, n_op), axis=-1, keepdims=True)
    return s_pad, ids.astype(jnp.int32)


def _exclusive_prefix_sum_rows(mask_f):
    """Exclusive prefix sum of an (S,1) f32 0/1 vector along axis 0.

    Hillis-Steele log-step scan built from pltpu.roll: O(S log S) XLU work, O(S)
    memory (no (S,S) triangular matmul).
    """
    s = mask_f.shape[0]
    row = lax.broadcasted_iota(jnp.int32, mask_f.shape, 0)
    incl = mask_f
    shift = 1
    while shift < s:
        rolled = pltpu.roll(incl, shift=shift, axis=0)       # rolled[i] = incl[i-shift]
        incl = incl + jnp.where(row >= shift, rolled, 0.0)
        shift *= 2
    return incl - mask_f


def _gather_update_rows(x, ids, update_id, max_update):
    """Compact rows of x where ids == update_id, zero-padded to max_update rows."""
    s = x.shape[0]
    mask = ids == update_id                                   # (S, 1) bool
    mask_f = mask.astype(jnp.float32)
    pos = _exclusive_prefix_sum_rows(mask_f).astype(jnp.int32)  # (S, 1)
    jcol = lax.broadcasted_iota(jnp.int32, (s, max_update), 1)
    # pt[i, j] == 1 iff row i is the (j+1)-th UPDATE row of this batch element
    pt = jnp.where((pos == jcol) & mask, 1.0, 0.0).astype(x.dtype)     # (S, MU)
    # out[j, h] = sum_i pt[i, j] * x[i, h]  (single nonzero per output row => exact copy)
    return lax.dot_general(pt, x, (((0,), (0,)), ((), ())),
                           preferred_element_type=jnp.float32)          # (MU, H)


# ---------------------------------------------------------------------------
# Kernels
# ---------------------------------------------------------------------------
def _fused_argmax_kernel(x_ref, w_ref, b_ref, scores_ref, dec_ref, *,
                         n_op, update_id, max_update):
    # Hot path: linear + argmax + gather in one pass; x stays resident in VMEM.
    x = x_ref[0]                                              # (S, H)
    s_pad, ids = _scores_and_ids(x, w_ref[...], b_ref[...], n_op)
    scores_ref[0] = s_pad[:, :n_op].astype(scores_ref.dtype)
    dec_ref[0] = _gather_update_rows(x, ids, update_id,
                                     max_update).astype(dec_ref.dtype)


def _fused_given_ids_kernel(ids_ref, x_ref, w_ref, b_ref, scores_ref, dec_ref, *,
                            n_op, update_id, max_update):
    # Caller-provided op_ids: linear + gather (no argmax) in one pass.
    x = x_ref[0]
    s_pad = _scores_padded(x, w_ref[...], b_ref[...])
    scores_ref[0] = s_pad[:, :n_op].astype(scores_ref.dtype)
    dec_ref[0] = _gather_update_rows(x, ids_ref[0], update_id,
                                     max_update).astype(dec_ref.dtype)


def _cls_argmax_kernel(x_ref, w_ref, b_ref, scores_ref, ids_ref, *, n_op):
    # Cold path stage 1 (max_update must be resolved on host first).
    x = x_ref[0]
    s_pad, ids = _scores_and_ids(x, w_ref[...], b_ref[...], n_op)
    scores_ref[0] = s_pad[:, :n_op].astype(scores_ref.dtype)
    ids_ref[0] = ids                                          # (S, 1) int32


def _scores_only_kernel(x_ref, w_ref, b_ref, scores_ref, *, n_op):
    scores_ref[0] = _scores_padded(x_ref[0], w_ref[...],
                                   b_ref[...])[:, :n_op].astype(scores_ref.dtype)


def _gather_kernel(ids_ref, x_ref, dec_ref, *, update_id, max_update):
    dec_ref[0] = _gather_update_rows(x_ref[0], ids_ref[0], update_id,
                                     max_update).astype(dec_ref.dtype)


# ---------------------------------------------------------------------------
# Wrapper = forward() of OperatePrediction
# ---------------------------------------------------------------------------
def _compiler_params(*block_nbytes):
    est = 3 * int(sum(block_nbytes)) + (8 << 20)              # blocks + headroom
    return pltpu.CompilerParams(
        dimension_semantics=("parallel",),                    # batch steps independent
        vmem_limit_bytes=int(min(max(est, 16 << 20), 64 << 20)),
    )


def _pad_params(w, b):
    _, n_op = w.shape
    npad = ((n_op + 127) // 128) * 128                        # lane-aligned MXU N
    w_p = jnp.pad(w, ((0, 0), (0, npad - n_op)))
    b_p = jnp.pad(b.reshape(-1), (0, npad - n_op)).reshape(1, npad)
    return w_p, b_p, npad


def operate_prediction_forward(state_output, w, b, update_id,
                               op_ids=None, max_update=None, input_ids=None):
    """Returns (state_scores, decoder_inputs), matching the PyTorch module.

    state_output: [B, S, H] float;  w: [H, n_op];  b: [n_op].
    `input_ids` is accepted for signature parity (only used for device placement
    in the PyTorch code) and ignored here.
    """
    del input_ids
    B, S, H = state_output.shape
    n_op = w.shape[1]
    out_dtype = state_output.dtype
    update_id = int(update_id)
    w_p, b_p, npad = _pad_params(w, b)

    # TODO(synk): nn.Dropout implemented as eval-mode identity (no RNG mask / scaling).

    x_bytes = S * H * out_dtype.itemsize
    w_bytes = H * npad * 4
    sc_bytes = S * n_op * 4

    xwb_specs = [pl.BlockSpec((1, S, H), lambda bi: (bi, 0, 0)),
                 pl.BlockSpec((H, npad), lambda bi: (0, 0)),
                 pl.BlockSpec((1, npad), lambda bi: (0, 0))]
    scores_spec = pl.BlockSpec((1, S, n_op), lambda bi: (bi, 0, 0))
    scores_shape = jax.ShapeDtypeStruct((B, S, n_op), out_dtype)

    # ---- caller-provided op_ids: fully fused (linear + gather with given ids) ------
    if op_ids is not None:
        op_ids_arr = op_ids.astype(jnp.int32)
        if max_update is None:
            # PyTorch .item(): data-dependent output size -> host sync, but no kernel
            # launch is needed to obtain the count from the given op_ids.
            counts = jnp.sum((op_ids_arr == update_id).astype(jnp.int32), axis=-1)
            max_update = int(jax.device_get(jnp.max(counts)))
        mu = int(max_update)
        if mu == 0:
            scores = pl.pallas_call(
                functools.partial(_scores_only_kernel, n_op=n_op),
                out_shape=scores_shape,
                grid_spec=pltpu.PrefetchScalarGridSpec(
                    num_scalar_prefetch=0, grid=(B,),
                    in_specs=xwb_specs, out_specs=scores_spec),
                compiler_params=_compiler_params(x_bytes, w_bytes, sc_bytes),
            )(state_output, w_p, b_p)
            return scores, jnp.zeros((B, 0, H), dtype=out_dtype)

        dec_bytes = mu * H * out_dtype.itemsize
        scores, dec = pl.pallas_call(
            functools.partial(_fused_given_ids_kernel, n_op=n_op,
                              update_id=update_id, max_update=mu),
            out_shape=(scores_shape, jax.ShapeDtypeStruct((B, mu, H), out_dtype)),
            grid_spec=pltpu.PrefetchScalarGridSpec(
                num_scalar_prefetch=0, grid=(B,),
                in_specs=[pl.BlockSpec((1, S, 1), lambda bi: (bi, 0, 0))] + xwb_specs,
                out_specs=(scores_spec,
                           pl.BlockSpec((1, mu, H), lambda bi: (bi, 0, 0)))),
            compiler_params=_compiler_params(S * 4, x_bytes, w_bytes, sc_bytes,
                                             dec_bytes),
        )(op_ids_arr[..., None], state_output, w_p, b_p)
        return scores, dec

    # ---- hot path: predicted op ids + statically known max_update -> fully fused ---
    if max_update is not None and int(max_update) > 0:
        mu = int(max_update)
        dec_bytes = mu * H * out_dtype.itemsize
        scores, dec = pl.pallas_call(
            functools.partial(_fused_argmax_kernel, n_op=n_op,
                              update_id=update_id, max_update=mu),
            out_shape=(scores_shape, jax.ShapeDtypeStruct((B, mu, H), out_dtype)),
            grid_spec=pltpu.PrefetchScalarGridSpec(
                num_scalar_prefetch=0, grid=(B,),
                in_specs=xwb_specs,
                out_specs=(scores_spec,
                           pl.BlockSpec((1, mu, H), lambda bi: (bi, 0, 0)))),
            compiler_params=_compiler_params(x_bytes, w_bytes, sc_bytes, dec_bytes),
        )(state_output, w_p, b_p)
        return scores, dec

    # ---- cold path: classifier (+argmax) first, host-resolve max_update, gather ----
    scores, ids3 = pl.pallas_call(
        functools.partial(_cls_argmax_kernel, n_op=n_op),
        out_shape=(scores_shape, jax.ShapeDtypeStruct((B, S, 1), jnp.int32)),
        grid_spec=pltpu.PrefetchScalarGridSpec(
            num_scalar_prefetch=0, grid=(B,),
            in_specs=xwb_specs,
            out_specs=(scores_spec,
                       pl.BlockSpec((1, S, 1), lambda bi: (bi, 0, 0)))),
        compiler_params=_compiler_params(x_bytes, w_bytes, sc_bytes, S * 4),
    )(state_output, w_p, b_p)

    if max_update is None:
        # Data-dependent output size (PyTorch's .item()): host sync + recompile per
        # distinct value.  Pass max_update explicitly to stay on the fused hot path.
        counts = jnp.sum((ids3[..., 0] == update_id).astype(jnp.int32), axis=-1)
        max_update = int(jax.device_get(jnp.max(counts)))
    max_update = int(max_update)

    if max_update == 0:
        return scores, jnp.zeros((B, 0, H), dtype=out_dtype)

    dec_bytes = max_update * H * out_dtype.itemsize
    dec = pl.pallas_call(
        functools.partial(_gather_kernel, update_id=update_id,
                          max_update=max_update),
        out_shape=jax.ShapeDtypeStruct((B, max_update, H), out_dtype),
        grid_spec=pltpu.PrefetchScalarGridSpec(
            num_scalar_prefetch=0, grid=(B,),
            in_specs=[pl.BlockSpec((1, S, 1), lambda bi: (bi, 0, 0)),
                      pl.BlockSpec((1, S, H), lambda bi: (bi, 0, 0))],
            out_specs=pl.BlockSpec((1, max_update, H), lambda bi: (bi, 0, 0))),
        compiler_params=_compiler_params(S * 4, x_bytes, dec_bytes),
    )(ids3, state_output)

    return scores, dec


# ---------------------------------------------------------------------------
# Demo / sanity check
# ---------------------------------------------------------------------------
if __name__ == "__main__":
    B, S, H, n_op = 2, 8, 32, 4

    key = jax.random.PRNGKey(0)
    k1, k2, k3 = jax.random.split(key, 3)
    state_output = jax.random.normal(k1, (B, S, H), dtype=jnp.float32)
    # nn.Linear(hidden_size, n_op) weight, stored transposed as [H, n_op]
    w = 0.1 * jax.random.normal(k2, (H, n_op), dtype=jnp.float32)
    b = 0.1 * jax.random.normal(k3, (n_op,), dtype=jnp.float32)

    # numpy reference (mirrors the PyTorch forward)
    so_np = np.asarray(state_output)
    ref_scores = so_np @ np.asarray(w) + np.asarray(b)
    ref_ids = ref_scores.argmax(-1)
    # pick the most frequent predicted class as UPDATE so the gather path is exercised
    update_id = int(np.bincount(ref_ids.reshape(-1), minlength=n_op).argmax())
    ref_mask = ref_ids == update_id
    mu = int(ref_mask.sum(-1).max())
    ref_dec = np.zeros((B, mu, H), dtype=np.float32)
    for bi in range(B):
        rows = so_np[bi][ref_mask[bi]]
        ref_dec[bi, :rows.shape[0]] = rows

    # Path 1: PyTorch-default args (max_update resolved on host -> cls + gather kernels)
    scores_a, dec_a = operate_prediction_forward(state_output, w, b, update_id)
    jax.block_until_ready(scores_a); jax.block_until_ready(dec_a)

    # Path 2: fused single-kernel hot path (max_update known)
    scores_b, dec_b = operate_prediction_forward(state_output, w, b, update_id,
                                                 max_update=mu)
    jax.block_until_ready(scores_b); jax.block_until_ready(dec_b)

    for scores, dec in ((scores_a, dec_a), (scores_b, dec_b)):
        assert scores.shape == (B, S, n_op)
        assert dec.shape == (B, mu, H)
        assert np.allclose(np.asarray(scores), ref_scores, rtol=1e-5, atol=1e-5)
        assert np.allclose(np.asarray(dec), ref_dec, rtol=1e-5, atol=1e-5)

    # Path 3/4: caller-provided op_ids (gather follows them, not the argmax),
    # with max_update both host-resolved and caller-provided.
    given_ids = jnp.broadcast_to(
        jnp.tile(jnp.arange(n_op, dtype=jnp.int32), S // n_op + 1)[:S], (B, S))
    giv = np.asarray(given_ids)
    mask_c = giv == update_id
    mu_c = int(mask_c.sum(-1).max())
    ref_dec_c = np.zeros((B, mu_c, H), dtype=np.float32)
    for bi in range(B):
        rows = so_np[bi][mask_c[bi]]
        ref_dec_c[bi, :rows.shape[0]] = rows

    scores_c, dec_c = operate_prediction_forward(state_output, w, b, update_id,
                                                 op_ids=given_ids)
    scores_d, dec_d = operate_prediction_forward(state_output, w, b, update_id,
                                                 op_ids=given_ids, max_update=mu_c)
    jax.block_until_ready(dec_c); jax.block_until_ready(dec_d)

    for scores, dec in ((scores_c, dec_c), (scores_d, dec_d)):
        assert scores.shape == (B, S, n_op)
        assert dec.shape == (B, mu_c, H)
        assert np.allclose(np.asarray(scores), ref_scores, rtol=1e-5, atol=1e-5)
        assert np.allclose(np.asarray(dec), ref_dec_c, rtol=1e-5, atol=1e-5)

    print("KERNEL_OK")
</pallas_src>

<mosaic_0001>
module attributes {stable_mosaic.version = 11 : i64} {
  func.func @_cls_argmax_kernel(%arg0: i32, %arg1: memref<1x8x32xf32, #tpu.memory_space<vmem>>, %arg2: memref<32x128xf32, #tpu.memory_space<vmem>>, %arg3: memref<1x128xf32, #tpu.memory_space<vmem>>, %arg4: memref<1x8x4xf32, #tpu.memory_space<vmem>>, %arg5: memref<1x8x1xi32, #tpu.memory_space<vmem>>) attributes {dimension_semantics = [#tpu.dimension_semantics<parallel>], iteration_bounds = array<i64: 2>, scalar_prefetch = 0 : i64, scratch_operands = 0 : i64, tpu.core_type = #tpu.core_type<tc>, window_params = [{transform_indices = @transform_0, window_bounds = array<i64: 1, 8, 32>}, {pipeline_mode = #tpu.pipeline_mode<synchronous>, transform_indices = @transform_1, window_bounds = array<i64: 32, 128>}, {pipeline_mode = #tpu.pipeline_mode<synchronous>, transform_indices = @transform_2, window_bounds = array<i64: 1, 128>}, {transform_indices = @transform_3, window_bounds = array<i64: 1, 8, 4>}, {transform_indices = @transform_4, window_bounds = array<i64: 1, 8, 1>}]} {
    %c0 = arith.constant 0 : index
    %c0_0 = arith.constant 0 : index
    %c0_1 = arith.constant 0 : index
    %0 = vector.load %arg1[%c0, %c0_0, %c0_1] : memref<1x8x32xf32, #tpu.memory_space<vmem>>, vector<1x8x32xf32>
    %1 = vector.shape_cast %0 : vector<1x8x32xf32> to vector<8x32xf32>
    %c0_2 = arith.constant 0 : index
    %c0_3 = arith.constant 0 : index
    %2 = vector.load %arg2[%c0_2, %c0_3] : memref<32x128xf32, #tpu.memory_space<vmem>>, vector<32x128xf32>
    %c0_4 = arith.constant 0 : index
    %c0_5 = arith.constant 0 : index
    %3 = vector.load %arg3[%c0_4, %c0_5] : memref<1x128xf32, #tpu.memory_space<vmem>>, vector<1x128xf32>
    %cst = arith.constant dense<0.000000e+00> : vector<8x128xf32>
    %4 = tpu.matmul %1, %2, %cst {dimension_numbers = #tpu.dot_dimension_numbers<[1], [0], [0], [1], [0, 0, 1, 1], [], []>} : vector<8x32xf32>, vector<32x128xf32>, vector<8x128xf32> -> vector<8x128xf32>
    %5 = vector.broadcast %3 : vector<1x128xf32> to vector<8x128xf32>
    %6 = arith.addf %4, %5 : vector<8x128xf32>
    %7 = tpu.iota {dimensions = array<i32: 1>} : vector<8x128xi32>
    %c4_i32 = arith.constant 4 : i32
    %8 = vector.broadcast %c4_i32 : i32 to vector<8x128xi32>
    %9 = arith.cmpi slt, %7, %8 : vector<8x128xi32>
    %cst_6 = arith.constant -3.40282347E+38 : f32
    %10 = vector.broadcast %cst_6 : f32 to vector<8x128xf32>
    %11 = arith.select %9, %6, %10 : vector<8x128xi1>, vector<8x128xf32>
    %cst_7 = arith.constant dense<0xFF800000> : vector<8xf32>
    %12 = vector.multi_reduction <maximumf>, %11, %cst_7 [1] : vector<8x128xf32> to vector<8xf32>
    %13 = vector.shape_cast %12 : vector<8xf32> to vector<8x1xf32>
    %14 = vector.broadcast %13 : vector<8x1xf32> to vector<8x128xf32>
    %15 = arith.cmpf oeq, %11, %14 : vector<8x128xf32>
    %16 = arith.andi %15, %9 : vector<8x128xi1>
    %c4_i32_8 = arith.constant 4 : i32
    %17 = vector.broadcast %c4_i32_8 : i32 to vector<8x128xi32>
    %18 = arith.select %16, %7, %17 : vector<8x128xi1>, vector<8x128xi32>
    %cst_9 = arith.constant dense<2147483647> : vector<8xi32>
    %19 = vector.multi_reduction <minsi>, %18, %cst_9 [1] : vector<8x128xi32> to vector<8xi32>
    %20 = vector.shape_cast %19 : vector<8xi32> to vector<8x1xi32>
    %21 = vector.extract_strided_slice %6 {offsets = [0, 0], sizes = [8, 4], strides = [1, 1]} : vector<8x128xf32> to vector<8x4xf32>
    %c0_10 = arith.constant 0 : index
    %c0_11 = arith.constant 0 : index
    %c0_12 = arith.constant 0 : index
    %22 = vector.load %arg4[%c0_10, %c0_11, %c0_12] : memref<1x8x4xf32, #tpu.memory_space<vmem>>, vector<1x8x4xf32>
    %23 = vector.shape_cast %22 : vector<1x8x4xf32> to vector<8x4xf32>
    %24 = vector.shape_cast %21 : vector<8x4xf32> to vector<1x8x4xf32>
    tpu.vector_store %arg4[%c0_10, %c0_11, %c0_12], %24 {strides = array<i32>} : memref<1x8x4xf32, #tpu.memory_space<vmem>>, vector<1x8x4xf32>,
    %c0_13 = arith.constant 0 : index
    %c0_14 = arith.constant 0 : index
    %c0_15 = arith.constant 0 : index
    %25 = vector.load %arg5[%c0_13, %c0_14, %c0_15] : memref<1x8x1xi32, #tpu.memory_space<vmem>>, vector<1x8x1xi32>
    %26 = vector.shape_cast %25 : vector<1x8x1xi32> to vector<8x1xi32>
    %27 = vector.shape_cast %20 : vector<8x1xi32> to vector<1x8x1xi32>
    tpu.vector_store %arg5[%c0_13, %c0_14, %c0_15], %27 {strides = array<i32>} : memref<1x8x1xi32, #tpu.memory_space<vmem>>, vector<1x8x1xi32>,
    return
  }
  func.func @transform_0(%arg0: i32) -> (i32, i32, i32) {
    %c0_i32 = arith.constant 0 : i32
    %c0_i32_0 = arith.constant 0 : i32
    %c0_i32_1 = arith.constant 0 : i32
    return %arg0, %c0_i32, %c0_i32_0 : i32, i32, i32
  }
  func.func @transform_1(%arg0: i32) -> (i32, i32) {
    %c0_i32 = arith.constant 0 : i32
    %c0_i32_0 = arith.constant 0 : i32
    %c0_i32_1 = arith.constant 0 : i32
    return %c0_i32, %c0_i32_0 : i32, i32
  }
  func.func @transform_2(%arg0: i32) -> (i32, i32) {
    %c0_i32 = arith.constant 0 : i32
    %c0_i32_0 = arith.constant 0 : i32
    %c0_i32_1 = arith.constant 0 : i32
    return %c0_i32, %c0_i32_0 : i32, i32
  }
  func.func @transform_3(%arg0: i32) -> (i32, i32, i32) {
    %c0_i32 = arith.constant 0 : i32
    %c0_i32_0 = arith.constant 0 : i32
    %c0_i32_1 = arith.constant 0 : i32
    return %arg0, %c0_i32, %c0_i32_0 : i32, i32, i32
  }
  func.func @transform_4(%arg0: i32) -> (i32, i32, i32) {
    %c0_i32 = arith.constant 0 : i32
    %c0_i32_0 = arith.constant 0 : i32
    %c0_i32_1 = arith.constant 0 : i32
    return %arg0, %c0_i32, %c0_i32_0 : i32, i32, i32
  }
}

</mosaic_0001>

<bundles_post_ra>
// kernel: tpu_custom_call.1
= control target key start
LH: loop header
LB: loop body
LE: loop exit
PB: predicated region body
PF: predicated region fallthrough
CT: control target
= control target key end

     0   :  { %10 = vsyncpa [#allocation3], 0  ;;  %s828_s0 = inlined_call_operand.hbm [shape: f32[2,8,32], index: 0, kind: input, shape index: {}]   ;;  %s829_s1 = inlined_call_operand.hbm [shape: f32[32,128], index: 1, kind: input, shape index: {}]   ;;  %s830_s2 = inlined_call_operand.vmem [shape: f32[1,128], index: 2, kind: input, shape index: {}]   ;;  %s831_s3 = inlined_call_operand.vmem [shape: f32[2,8,4], index: 3, kind: output, shape index: {0}]   ;;  %s832_s4 = inlined_call_operand.vmem [shape: s32[2,8,1], index: 4, kind: output, shape index: {1}]  }
   0x1   :  { %12 = vsyncpa [#allocation3 + $0x1], 0 }
   0x2   :  { %13 = vsyncpa [#allocation5], 0  ;;  %s680_s15 = smov 0   ;;  %s682_s16 = smov 0  }
   0x3   :  { %s684_s17 = smov 0   ;;  %s686_s18 = smov 0  }
   0x4 LB: > { %s699_s19 = sadd.s32 4294967295, %s646_s18   ;;  %p39_p0 = scmp.ne.s32.totalorder %s638_s16, %s634_s15  ;;  %s646_s18 = sphi %s686_s18, %s847_s18   ;;  %s642_s17 = sphi %s684_s17, %s846_s17   ;;  %s638_s16 = sphi %s682_s16, %s845_s16   ;;  %s634_s15 = sphi %s680_s15, %s844_s15  }
   0x5   : > { %p833_p1 = scmp.eq.s32.totalorder %s699_s19, 0  ;;  %p459_p2 = scmp.ge.s32.totalorder %s646_s18, 1 }
   0x6   : > { %p144_p3 = scmp.lt.s32.totalorder %s646_s18, 3  ;;  %s648_s22 = smov [#allocation4]  }
   0x7   : > { %p707_p4 = por %p833_p1, %p39_p0  ;;  %s156_s23 = sshll.u32 %s648_s22, 4  ;;  %s157_s23 = int_to_ptr.vmem [resolvable:$true] %s156_s23 }
   0x8   : > { %p711_p5 = pnand %p459_p2, %p144_p3  ;;  %s724_s25 = sadd.s32 1, %s646_s18  }
   0x9   : > { %s836_s20 = scalar_select %p707_p4, 1, 0 }
   0xa   : > { %s837_s21 = scalar_select %p711_p5, 1, 0 }
   0xb   : > { %p501_p6 = pneg %p711_p5  ;;  %s26_s26 = sadd.s32 1, %s642_s17 }
   0xc   : > { %s23_s27 = ssub.s32 %s646_s18, %s724_s25  ;;  %s550_s30 = scalar_lea.hbm %s829_s1, 512 }
   0xd   : > { %p719_p7 = pnand %p501_p6, %p833_p1  ;;  %p551_p8 = scmp.ne.s32.totalorder %s829_s1, %s550_s30 }
   0xe   : > { %p557_p12 = scmp.lt.u32.totalorder %s550_s30, %s829_s1 }
   0xf   : > { %p552_p9 = pneg %p719_p7 }
  0x11   : > { %p553_p10 = pnand %p552_p9, %p551_p8 }
  0x13   : > { %p554_p11 = pneg %p553_p10 }
  0x15   : > { %p559_p13 = pnand %p557_p12, %p554_p11 }
  0x17   : > { %562 = shalt.err (!%p559_p13)
}
  0x18   : > { %s563_s9 = scalar_lea.vmem %s157_s23, 512  ;;  %p571_p6 = scmp.lt.s32.totalorder %s157_s23, %s157_s23 }
  0x19   : > { %p564_p0 = scmp.ne.s32.totalorder %s157_s23, %s563_s9  ;;  %p572_p1 = scmp.lt.s32.totalorder %s563_s9, %s563_s9 }
  0x1b   : > { %p566_p2 = pnand %p564_p0, %p552_p9  ;;  %p573_p4 = por %p572_p1, %p571_p6 }
  0x1d   : > { %p567_p3 = pneg %p566_p2 }
  0x1f   : > { %p574_p5 = pnand %p573_p4, %p567_p3 }
  0x21   : > { %577 = shalt.err (!%p574_p5)
}
  0x22   : > { %s649_s10 = smov 128   ;;  %s650_s11 = smov 8  }
  0x23   : > { %504 = dma.hbm_to_vmem [thread:$0]  (!%p719_p7), %s829_s1, 512, %s157_s23, [#allocation5], %s649_s10, %s649_s10, %s650_s11  }
  0x24   : > { %p24_p8 = scmp.eq.s32.totalorder %s23_s27, 0  ;;  %p33_p9 = scmp.ne.s32.totalorder %s642_s17, %s638_s16 }
  0x25   : > { %p34_p1 = scmp.eq.s32.totalorder %s646_s18, 0  ;;  %p510_p4 = scmp.lt.s32.totalorder %s646_s18, 2 }
  0x26   : > { %s750_s14 = scalar_select %p24_p8, %s642_s17, %s26_s26  }
  0x27   : > { %p35_p5 = por %p34_p1, %p33_p9  ;;  %s173_s15 = sand.u32 1, %s642_s17  }
  0x28   : > { %s462_s22 = sshll.u32 %s173_s15, 3  ;;  %s463_s28 = sshll.u32 %s646_s18, 7 }
  0x29   : > { %s757_s5 = scalar_lea.hbm %s828_s0, %s463_s28  ;;  %s177_s23 = scalar_lea.vmem [#allocation2], %s462_s22 }
  0x2a   : > { %s184_s24 = sshll.u32 %s177_s23, 4  ;;  %p761_p7 = pnand %p510_p4, %p35_p5  ;;  %s759_s24 = int_to_ptr.vmem [resolvable:$true] %s184_s24 }
  0x2b   : > { %s174_s18 = scalar_lea.sflag [#allocation3], %s173_s15  ;;  %s578_s27 = scalar_lea.hbm %s757_s5, 128 }
  0x2c   : > { %p579_p10 = scmp.ne.s32.totalorder %s757_s5, %s578_s27  ;;  %p580_p11 = pneg %p761_p7 }
  0x2d   : > { %s583_s8 = scalar_lea.hbm %s828_s0, 256  ;;  %p584_p0 = scmp.lt.u32.totalorder %s757_s5, %s828_s0 }
  0x2e   : > { %p581_p12 = pnand %p580_p11, %p579_p10  ;;  %p585_p2 = scmp.lt.u32.totalorder %s583_s8, %s578_s27 }
  0x2f   : > { %p587_p6 = scmp.lt.u32.totalorder %s578_s27, %s757_s5 }
  0x30   : > { %p582_p13 = pneg %p581_p12  ;;  %p586_p3 = por %p585_p2, %p584_p0 }
  0x32   : > { %p588_p8 = por %p587_p6, %p586_p3 }
  0x34   : > { %p589_p9 = pnand %p588_p8, %p582_p13 }
  0x36   : > { %592 = shalt.err (!%p589_p9)
}
  0x37   : > { %s593_s11 = scalar_lea.vmem %s759_s24, 128  ;;  %s651_s12 = smov [#allocation2]  }
  0x38   : > { %p594_p1 = scmp.ne.s32.totalorder %s759_s24, %s593_s11  ;;  %s598_s13 = sshll.u32 %s651_s12, 4  ;;  %s599_s13 = int_to_ptr.vmem [resolvable:$false] %s598_s13 }
  0x39   : > { %s600_s15 = scalar_lea.vmem %s599_s13, 256  ;;  %p601_p10 = scmp.lt.s32.totalorder %s759_s24, %s599_s13 }
  0x3a   : > { %p596_p4 = pnand %p594_p1, %p580_p11  ;;  %p602_p12 = scmp.lt.s32.totalorder %s600_s15, %s593_s11 }
  0x3c   : > { %p597_p5 = pneg %p596_p4  ;;  %p603_p0 = por %p602_p12, %p601_p10 }
  0x3e   : > { %p604_p2 = pnand %p603_p0, %p597_p5 }
  0x40   : > { %607 = shalt.err (!%p604_p2)
}
  0x41   : > { %508 = dma.hbm_to_vmem [thread:$0]  (!%p761_p7), %s757_s5, 128, %s759_s24, %s174_s18  }
  0x42   : > { %p840_p13 = scmp.ne.s32.totalorder %s837_s21, 0 }
  0x43   : > { %s195_s22 = sand.u32 (!%p840_p13), 1, %s638_s16   ;;  %p841_p11 = scmp.ne.s32.totalorder (!%p840_p13), %s836_s20, 0 }
  0x44   : > { %193 = sbr.rel (%p840_p13) target bundleno = 744 (0x2e8), region = 32  ;;  %s465_s28 = sshll.u32 (!%p840_p13), %s195_s22, 3 }
  0x45   : > { %s196_s29 = scalar_lea.sflag (!%p840_p13), [#allocation3], %s195_s22  ;;  %s199_s30 = scalar_lea.vmem (!%p840_p13), [#allocation2], %s465_s28 }
  0x4b   : > { %625 = dma.done.wait (%p841_p11), %s196_s29, 128  }
  0x4c   : > { %627 = vsyncadd (%p841_p11), %s196_s29, 4294967168  ;;  %p842_p3 = scmp.eq.s32.totalorder %s699_s19, 0 }
  0x4e   : > { %629 = dma.done.wait (%p842_p3), [#allocation5], 512   ;;  %p843_p6 = pmov %p842_p3 }
  0x4f   : > { %v652_v0 = vmov 0.0|0.0   ;;  %vm653_vm0 = vmmov 0   ;;  %v654_v1 = vmov 0.0   ;;  %v240_v2 = vld [vmem:[#allocation4] sm:$0xff]  ;;  %v241_v3 = vld [vmem:[#allocation4 + $0x8] sm:$0xff]  ;;  %v242_v4 = vld [vmem:[#allocation4 + $0x10] sm:$0xff]  ;;  %v325_v9 = vlaneseq }
  0x50   : > { %631 = vsyncadd (%p843_p6), [#allocation5], 4294966784  ;;  %489 = vmatprep.subr.bf16.mxu0 %v652_v0  ;;  %486 = vmatprep.mubr.msk.f32.mxu0 %vm653_vm0, %v654_v1  ;;  %v490_v5 = vpack.c.bf16 %v241_v3, %v240_v2  ;;  %v243_v6 = vld [vmem:[#allocation4 + $0x18] sm:$0xff]  ;;  %vm251_vm1 = vcmask 261120   ;;  %p231_p7 = scmp.lt.s32.totalorder %s699_s19, 1  ;;  %vm348_vm2 = vcmask 31744  }
  0x51   : > { %v493_v7 = vpack.c.bf16 %v243_v6, %v242_v4  ;;  %v239_v8 = vld [vmem:[%s199_s30] sm:$0xff]  ;;  %v326_v10 = vand.u32 127, %v325_v9  ;;  %vm350_vm7 = vcmask 7168  }
  0x52   : > { %491 = vmatpush3.bf16.msra.mxu0 %v490_v5  ;;  %s849_s19 = smov (!%p231_p7, %s699_s19), 1  ;;  %v469_v11 = vld [vmem:[%s830_s2] ss:$0 sm:$0xff] }
  0x53   : > { %492 = vmatprep.subr.bf16.mxu0 %v652_v0  ;;  %s467_s20 = sshll.u32 %s849_s19, 3  ;;  %vm327_vm3 = vcmp.lt.s32.totalorder %v326_v10, 4 }
  0x54   : > { %s234_s26 = scalar_lea.vmem %s831_s3, %s467_s20  ;;  %s238_s27 = scalar_lea.vmem %s832_s4, %s467_s20 }
  0x56   : > { %494 = vmatpush3.bf16.msra.mxu0 %v493_v7 }
  0x59   : > { %487 = vmatmul.mubr.msk.f32.vlgmr.msra.gmra.mrb[0].mxu0 %vm251_vm1, %v239_v8 }
 0x12c   : > { %v321_v12 = vpop.f32.mrb[0].mxu0 }
 0x12d   : > { %v322_v13 = vadd.f32 %v469_v11, %v321_v12  ;;  %v488_v14 = vpop.f32.mrb[1].mxu0 }
 0x12f   : > { %349 = vst.msk [vmem:[%s234_s26] sm:$0xff] %vm348_vm2, %v322_v13  ;;  %v328_v15 = vsel %vm327_vm3, %v322_v13, -3.4028235e+38 }
 0x130   : > { %329 = vmax.xlane.f32.xlu0 %v328_v15 }
 0x1bd   : > { %v330_v16 = vpop.xlane.xlu0 %329 }
 0x1be   : > { %vm331_vm4 = vcmp.eq.f32.partialorder %v328_v15, %v330_v16 }
 0x1bf   : > { %vm332_vm5 = vmand %vm331_vm4, %vm327_vm3 }
 0x1c0   : > { %v333_v17 = vsel %vm332_vm5, %v326_v10, 4 }
 0x1c1   : > { %v335_v18 = vshra.s32 %v333_v17, 16  ;;  %v334_v20 = vand.u32 65535, %v333_v17 }
 0x1c3   : > { %v337_v19 = vcvt.s32.f32 %v335_v18  ;;  %v336_v22 = vcvt.s32.f32 %v334_v20 }
 0x1c5   : > { %338 = vmin.xlane.f32.xlu0 %v337_v19 }
 0x252   : > { %v339_v21 = vpop.xlane.xlu0 %338 }
 0x253   : > { %vm340_vm6 = vcmp.eq.f32.partialorder %v337_v19, %v339_v21  ;;  %v345_v24 = vcvt.f32.s32 %v339_v21 }
 0x254   : > { %v341_v23 = vsel %vm340_vm6, %v336_v22, inf }
 0x255   : > { %342 = vmin.xlane.f32.xlu1 %v341_v23  ;;  %v346_v26 = vshll.u32 %v345_v24, 16 }
 0x2e2   : > { %v343_v25 = vpop.xlane.xlu1 %342 }
 0x2e3   : > { %v344_v27 = vcvt.f32.s32 %v343_v25 }
 0x2e5   : > { %v347_v28 = vadd.s32 %v346_v26, %v344_v27 }
 0x2e7   : > { %351 = vst.msk [vmem:[%s238_s27] sm:$0xff] %vm350_vm7, %v347_v28 }
 0x2e8 PF: > { %p16_p8 = scmp.ge.s32.totalorder %s724_s25, 4   ;;  %s844_s15 = smov %s638_s16 }
 0x2e9   : > { %s845_s16 = smov %s642_s17  ;;  %s846_s17 = smov %s750_s14 }
 0x2ea   : > { %s847_s18 = smov %s724_s25  ;;  %18 = sbr.rel (!%p16_p8) target bundleno = 4 (0x4), region = 88 }
 0x2f1   :  { %385 = vsyncpa [#allocation3], 1 }
 0x2f2   :  { %387 = vsyncpa [#allocation3 + $0x1], 1 }
 0x2f3   :  { %388 = vsyncpa [#allocation5], 1 }

</bundles_post_ra>
